<compile_context>
chip_gen: v7x
topology: tpu7x:2x2x1
jax: 0.10.0
libtpu: 0.0.40
codegen_flags: <defaults>
</compile_context>

<pallas_src>
import functools
import math

import jax
import jax.numpy as jnp
from jax.experimental import pallas as pl
from jax.experimental.pallas import tpu as pltpu

_LANE = 128
_MAX_PACKED_LANES = 512     # cap on packed lane width (keeps seg matmul cheap)
_MAX_ROW_TILE = 8192        # row-tile cap (0.5-4 MiB blocks at narrow lane_w)
_MIN_SPLIT_ROWS = 512       # force a >=2-step grid only above this many rows


def _round_up(x, m):
    return -(-x // m) * m


def _addnorm_kernel(seed_ref, a_ref, b_ref, gamma_ref, beta_ref, *refs,
                    p, training, eps, packed):
    """One row-block of AddNorm: LayerNorm(dropout(b) + a).

    packed=True: several logical rows share one 128-multiple physical row;
    per-row (segment) mean / variance are computed with a block-diagonal
    segment-mean matrix on the otherwise idle MXU. The matmul returns each
    statistic already broadcast across its segment's lanes, so the
    numerically stable two-pass form costs the same as one-pass.
    """
    if packed:
        seg_ref, o_ref = refs
    else:
        (o_ref,) = refs

    a = a_ref[...]
    b = b_ref[...]

    if training and p > 0.0:
        if p >= 1.0:
            b = jnp.zeros_like(b)
        else:
            # Inverted dropout; integer-threshold compare on raw PRNG bits.
            # TODO(synk): uses the TPU hardware PRNG; the mask depends on the
            # row tiling and is not bit-identical to torch's RNG stream.
            pltpu.prng_seed(seed_ref[0] + pl.program_id(0))
            bits = pltpu.bitcast(pltpu.prng_random_bits(b.shape), jnp.uint32)
            thresh = jnp.uint32(min(int(round(p * (1 << 32))), (1 << 32) - 1))
            scale = jnp.asarray(1.0 / (1.0 - p), b.dtype)
            b = jnp.where(bits >= thresh, b * scale, jnp.zeros_like(b))
    # eval mode: dropout == identity.

    x = (a + b).astype(jnp.float32)          # single f32 upcast, after the add

    if packed:
        seg = seg_ref[...]                   # (L, L) block-diag, entries 1/hidden
        mean = jnp.dot(x, seg, preferred_element_type=jnp.float32,
                       precision=jax.lax.Precision.HIGHEST)
        d = x - mean                         # mean already broadcast per segment
        var = jnp.dot(d * d, seg, preferred_element_type=jnp.float32,
                      precision=jax.lax.Precision.HIGHEST)
    else:
        inv_h = jnp.float32(1.0 / x.shape[-1])
        mean = jnp.sum(x, axis=-1, keepdims=True) * inv_h
        d = x - mean
        var = jnp.sum(d * d, axis=-1, keepdims=True) * inv_h

    inv = jax.lax.rsqrt(var + jnp.float32(eps))     # EUP, effectively free
    o_ref[...] = (d * inv * gamma_ref[...] + beta_ref[...]).astype(o_ref.dtype)


def add_norm(input_a, input_b, gamma, beta, *, dropout_p=0.1, training=False,
             eps=1e-5, seed=0, row_tile=None):
    assert input_a.shape == input_b.shape
    hidden = input_a.shape[-1]
    assert gamma.shape == (hidden,) and beta.shape == (hidden,)

    orig_shape = input_a.shape
    dtype = input_a.dtype
    itemsize = jnp.dtype(dtype).itemsize

    a2 = input_a.reshape(-1, hidden)
    b2 = input_b.reshape(-1, hidden)
    rows = a2.shape[0]

    # ---- Lane-dense packing: small hidden -> pack lcm(hidden,128)//hidden
    # logical rows into one physical row so every DMA / vreg / store is a full
    # multiple of the 128-lane vreg width (no masked vst.msk partial stores).
    pack = 1
    if hidden < _LANE:
        lane_lcm = hidden * _LANE // math.gcd(hidden, _LANE)
        if lane_lcm <= _MAX_PACKED_LANES:
            pack = lane_lcm // hidden
    lane_w = hidden * pack

    pad0 = 0
    if pack > 1:
        rows_packed = -(-rows // pack)
        pad0 = rows_packed * pack - rows
        if pad0:
            # TODO(synk): this pad costs one extra HBM pass over the inputs;
            # it only triggers when the row count is not a multiple of the
            # pack factor (rare for transformer batch*seq shapes).
            a2 = jnp.pad(a2, ((0, pad0), (0, 0)))
            b2 = jnp.pad(b2, ((0, pad0), (0, 0)))
        a2 = a2.reshape(rows_packed, lane_w)   # contiguous row-major: free
        b2 = b2.reshape(rows_packed, lane_w)
    else:
        rows_packed = rows

    # ---- VMEM budget per generation, derived from the actual chip:
    #   128 MiB (v5e/v6e): ~96 MiB scoped limit, ~80 MiB of block budget.
    #    64 MiB (v7x/TC) :  48 MiB scoped limit, ~32 MiB of block budget.
    try:
        vmem_cap = int(pltpu.get_tpu_info().vmem_capacity_bytes)
    except Exception:
        vmem_cap = 64 * 1024 * 1024            # conservative (v7x per-TC)
    vmem_limit = min((vmem_cap * 3) // 4, vmem_cap - 16 * 1024 * 1024)
    # Resident (non-row-tiled) buffers: seg matrix + gamma/beta (double-buf).
    fixed = (lane_w * lane_w * 4 if pack > 1 else 0) + 4 * 2 * lane_w * 4
    budget = max(vmem_limit - 16 * 1024 * 1024 - fixed, 4 * 1024 * 1024)

    # Per-row working set: double-buffered a/b/out (input dtype) + f32
    # intermediates (x, d, stats, output staging) and, when dropout is live,
    # the uint32 PRNG bits + select temporaries.
    dropout_active = bool(training) and 0.0 < float(dropout_p) < 1.0
    f32_temps = 24 if dropout_active else 16
    per_row = lane_w * (6 * itemsize + f32_temps)

    if row_tile is None:
        tm_cap = max(32, min(_MAX_ROW_TILE, budget // per_row) // 32 * 32)
    else:
        tm_cap = max(8, int(row_tile) // 8 * 8)

    if rows_packed <= tm_cap and rows_packed < _MIN_SPLIT_ROWS:
        tm = rows_packed      # single block == full leading dim (always legal)
        grid_m = 1
    else:
        # >=2 balanced steps so dimension_semantics=("parallel",) can shard
        # the row grid across v7x's two TensorCores; the ragged last block is
        # handled by Pallas itself (no wrapper-side pad or output slice).
        n_blocks = max(2, -(-rows_packed // tm_cap))
        tm = min(tm_cap, _round_up(-(-rows_packed // n_blocks), 32))
        grid_m = -(-rows_packed // tm)

    g2 = jnp.tile(gamma.astype(jnp.float32), pack).reshape(1, lane_w)
    bt2 = jnp.tile(beta.astype(jnp.float32), pack).reshape(1, lane_w)
    seed_arr = jnp.array([seed], dtype=jnp.int32)

    row_spec = pl.BlockSpec((tm, lane_w), lambda i, s: (i, 0))
    vec_spec = pl.BlockSpec((1, lane_w), lambda i, s: (0, 0))
    in_specs = [row_spec, row_spec, vec_spec, vec_spec]
    args = [a2, b2, g2, bt2]
    if pack > 1:
        lane_ids = jnp.arange(lane_w, dtype=jnp.int32) // hidden
        seg = (lane_ids[:, None] == lane_ids[None, :]).astype(jnp.float32)
        seg = seg / float(hidden)
        in_specs.append(pl.BlockSpec((lane_w, lane_w), lambda i, s: (0, 0)))
        args.append(seg)

    kernel = functools.partial(_addnorm_kernel, p=float(dropout_p),
                               training=bool(training), eps=float(eps),
                               packed=pack > 1)

    mm_flops = 4 * lane_w if pack > 1 else 4
    cost = pl.CostEstimate(
        flops=int(rows_packed * lane_w * (10 + mm_flops)),
        transcendentals=int(rows_packed * (lane_w if pack > 1 else 1)),
        bytes_accessed=int(3 * rows_packed * lane_w * itemsize),
    )

    out = pl.pallas_call(
        kernel,
        out_shape=jax.ShapeDtypeStruct((rows_packed, lane_w), dtype),
        grid_spec=pltpu.PrefetchScalarGridSpec(
            num_scalar_prefetch=1,               # dropout seed -> SMEM
            grid=(grid_m,),
            in_specs=in_specs,
            out_specs=row_spec,
        ),
        compiler_params=pltpu.CompilerParams(
            dimension_semantics=("parallel",),   # megacore-shard rows on v7x
            vmem_limit_bytes=int(vmem_limit),
        ),
        cost_estimate=cost,
    )(seed_arr, *args)

    if pack > 1:
        out = out.reshape(rows_packed * pack, hidden)
        if pad0:
            out = out[:rows]
    return out.reshape(orig_shape)


if __name__ == "__main__":
    # Small shapes implied by the module: (batch=2, seq=8, hidden=32).
    batch, seq, hidden = 2, 8, 32
    key = jax.random.PRNGKey(0)
    ka, kb = jax.random.split(key)
    input_a = jax.random.normal(ka, (batch, seq, hidden), dtype=jnp.float32)
    input_b = jax.random.normal(kb, (batch, seq, hidden), dtype=jnp.float32)

    # Deterministic LayerNorm parameters (PyTorch default init).
    gamma = jnp.ones((hidden,), dtype=jnp.float32)
    beta = jnp.zeros((hidden,), dtype=jnp.float32)

    # Eval-mode forward (dropout is identity), matching module.eval().
    out = add_norm(input_a, input_b, gamma, beta, dropout_p=0.1, training=False)
    out = jax.block_until_ready(out)

    # Sanity-check against a pure-JAX reference.
    x = input_a + input_b
    mean = x.mean(-1, keepdims=True)
    var = ((x - mean) ** 2).mean(-1, keepdims=True)
    ref = (x - mean) / jnp.sqrt(var + 1e-5) * gamma + beta
    err = float(jnp.max(jnp.abs(out - ref)))
    assert jnp.allclose(out, ref, atol=2e-5, rtol=2e-5), err

    print("KERNEL_OK")
</pallas_src>

<mosaic_0001>
module attributes {stable_mosaic.version = 11 : i64} {
  func.func @_addnorm_kernel(%arg0: i32, %arg1: memref<1xi32, #tpu.memory_space<smem>>, %arg2: memref<4x128xf32, #tpu.memory_space<vmem>>, %arg3: memref<4x128xf32, #tpu.memory_space<vmem>>, %arg4: memref<1x128xf32, #tpu.memory_space<vmem>>, %arg5: memref<1x128xf32, #tpu.memory_space<vmem>>, %arg6: memref<128x128xf32, #tpu.memory_space<vmem>>, %arg7: memref<4x128xf32, #tpu.memory_space<vmem>>) attributes {dimension_semantics = [#tpu.dimension_semantics<parallel>], iteration_bounds = array<i64: 1>, scalar_prefetch = 1 : i64, scratch_operands = 0 : i64, tpu.core_type = #tpu.core_type<tc>, window_params = [{transform_indices = @transform_0, window_bounds = array<i64: 4, 128>}, {transform_indices = @transform_1, window_bounds = array<i64: 4, 128>}, {pipeline_mode = #tpu.pipeline_mode<synchronous>, transform_indices = @transform_2, window_bounds = array<i64: 1, 128>}, {pipeline_mode = #tpu.pipeline_mode<synchronous>, transform_indices = @transform_3, window_bounds = array<i64: 1, 128>}, {pipeline_mode = #tpu.pipeline_mode<synchronous>, transform_indices = @transform_4, window_bounds = array<i64: 128, 128>}, {transform_indices = @transform_5, window_bounds = array<i64: 4, 128>}]} {
    %c0 = arith.constant 0 : index
    %c0_0 = arith.constant 0 : index
    %0 = vector.load %arg2[%c0, %c0_0] : memref<4x128xf32, #tpu.memory_space<vmem>>, vector<4x128xf32>
    %c0_1 = arith.constant 0 : index
    %c0_2 = arith.constant 0 : index
    %1 = vector.load %arg3[%c0_1, %c0_2] : memref<4x128xf32, #tpu.memory_space<vmem>>, vector<4x128xf32>
    %2 = arith.addf %0, %1 : vector<4x128xf32>
    %c0_3 = arith.constant 0 : index
    %c0_4 = arith.constant 0 : index
    %3 = vector.load %arg6[%c0_3, %c0_4] : memref<128x128xf32, #tpu.memory_space<vmem>>, vector<128x128xf32>
    %cst = arith.constant dense<0.000000e+00> : vector<4x128xf32>
    %4 = tpu.matmul %2, %3, %cst {dimension_numbers = #tpu.dot_dimension_numbers<[1], [0], [0], [1], [0, 0, 1, 1], [], []>, precision = #tpu.contract_precision<fp32>} : vector<4x128xf32>, vector<128x128xf32>, vector<4x128xf32> -> vector<4x128xf32>
    %5 = arith.subf %2, %4 : vector<4x128xf32>
    %6 = arith.mulf %5, %5 : vector<4x128xf32>
    %cst_5 = arith.constant dense<0.000000e+00> : vector<4x128xf32>
    %7 = tpu.matmul %6, %3, %cst_5 {dimension_numbers = #tpu.dot_dimension_numbers<[1], [0], [0], [1], [0, 0, 1, 1], [], []>, precision = #tpu.contract_precision<fp32>} : vector<4x128xf32>, vector<128x128xf32>, vector<4x128xf32> -> vector<4x128xf32>
    %cst_6 = arith.constant 9.99999974E-6 : f32
    %8 = vector.broadcast %cst_6 : f32 to vector<4x128xf32>
    %9 = arith.addf %7, %8 : vector<4x128xf32>
    %10 = math.rsqrt %9 : vector<4x128xf32>
    %11 = arith.mulf %5, %10 : vector<4x128xf32>
    %c0_7 = arith.constant 0 : index
    %c0_8 = arith.constant 0 : index
    %12 = vector.load %arg4[%c0_7, %c0_8] : memref<1x128xf32, #tpu.memory_space<vmem>>, vector<1x128xf32>
    %13 = vector.broadcast %12 : vector<1x128xf32> to vector<4x128xf32>
    %14 = arith.mulf %11, %13 : vector<4x128xf32>
    %c0_9 = arith.constant 0 : index
    %c0_10 = arith.constant 0 : index
    %15 = vector.load %arg5[%c0_9, %c0_10] : memref<1x128xf32, #tpu.memory_space<vmem>>, vector<1x128xf32>
    %16 = vector.broadcast %15 : vector<1x128xf32> to vector<4x128xf32>
    %17 = arith.addf %14, %16 : vector<4x128xf32>
    %c0_11 = arith.constant 0 : index
    %c0_12 = arith.constant 0 : index
    %18 = vector.load %arg7[%c0_11, %c0_12] : memref<4x128xf32, #tpu.memory_space<vmem>>, vector<4x128xf32>
    tpu.vector_store %arg7[%c0_11, %c0_12], %17 {strides = array<i32>} : memref<4x128xf32, #tpu.memory_space<vmem>>, vector<4x128xf32>,
    return
  }
  func.func @transform_0(%arg0: i32, %arg1: memref<1xi32, #tpu.memory_space<smem>>) -> (i32, i32) {
    %c0_i32 = arith.constant 0 : i32
    %c0_i32_0 = arith.constant 0 : i32
    return %arg0, %c0_i32 : i32, i32
  }
  func.func @transform_1(%arg0: i32, %arg1: memref<1xi32, #tpu.memory_space<smem>>) -> (i32, i32) {
    %c0_i32 = arith.constant 0 : i32
    %c0_i32_0 = arith.constant 0 : i32
    return %arg0, %c0_i32 : i32, i32
  }
  func.func @transform_2(%arg0: i32, %arg1: memref<1xi32, #tpu.memory_space<smem>>) -> (i32, i32) {
    %c0_i32 = arith.constant 0 : i32
    %c0_i32_0 = arith.constant 0 : i32
    %c0_i32_1 = arith.constant 0 : i32
    return %c0_i32, %c0_i32_0 : i32, i32
  }
  func.func @transform_3(%arg0: i32, %arg1: memref<1xi32, #tpu.memory_space<smem>>) -> (i32, i32) {
    %c0_i32 = arith.constant 0 : i32
    %c0_i32_0 = arith.constant 0 : i32
    %c0_i32_1 = arith.constant 0 : i32
    return %c0_i32, %c0_i32_0 : i32, i32
  }
  func.func @transform_4(%arg0: i32, %arg1: memref<1xi32, #tpu.memory_space<smem>>) -> (i32, i32) {
    %c0_i32 = arith.constant 0 : i32
    %c0_i32_0 = arith.constant 0 : i32
    %c0_i32_1 = arith.constant 0 : i32
    return %c0_i32, %c0_i32_0 : i32, i32
  }
  func.func @transform_5(%arg0: i32, %arg1: memref<1xi32, #tpu.memory_space<smem>>) -> (i32, i32) {
    %c0_i32 = arith.constant 0 : i32
    %c0_i32_0 = arith.constant 0 : i32
    return %arg0, %c0_i32 : i32, i32
  }
}

</mosaic_0001>

<bundles_post_ra>
// kernel: tpu_custom_call.1
= control target key start
LH: loop header
LB: loop body
LE: loop exit
PB: predicated region body
PF: predicated region fallthrough
CT: control target
= control target key end

     0   :  { %12 = vsyncpa [#allocation5], 0  ;;  %s2890_s0 = inlined_call_operand.<no memory space> [shape: s32[1], index: 0, kind: input, shape index: {}]   ;;  %s2891_s1 = inlined_call_operand.hbm [shape: f32[4,128], index: 1, kind: input, shape index: {}]   ;;  %s2892_s2 = inlined_call_operand.vmem [shape: f32[4,128], index: 2, kind: input, shape index: {}]   ;;  %s2893_s3 = inlined_call_operand.vmem [shape: f32[1,128], index: 3, kind: input, shape index: {}]   ;;  %s2894_s4 = inlined_call_operand.vmem [shape: f32[1,128], index: 4, kind: input, shape index: {}]   ;;  %s2895_s5 = inlined_call_operand.hbm [shape: f32[128,128], index: 5, kind: input, shape index: {}]   ;;  %s2896_s6 = inlined_call_operand.hbm [shape: f32[4,128], index: 6, kind: output, shape index: {}]  }
   0x1   :  { %13 = vsyncpa [#allocation8], 0 }
   0x2   :  { %14 = vsyncpa [#allocation6], 0  ;;  %s2404_s0 = smov [#allocation4]   ;;  %s2405_s22 = smov [#allocation7]  }
   0x3   :  { %s21_s21 = sshll.u32 %s2404_s0, 4  ;;  %s36_s23 = sshll.u32 %s2405_s22, 4  ;;  %s22_s21 = int_to_ptr.vmem [resolvable:$true] %s21_s21  ;;  %s2447_s23 = int_to_ptr.vmem [resolvable:$true] %s36_s23 }
   0x4   :  { %s2332_s26 = scalar_lea.hbm %s2891_s1, 64 }
   0x5   :  { %p2333_p0 = scmp.ne.s32.totalorder %s2891_s1, %s2332_s26  ;;  %p2336_p1 = scmp.lt.u32.totalorder %s2332_s26, %s2891_s1 }
   0x7   :  { %p2338_p2 = pnand %p2336_p1, %p2333_p0 }
   0x9   :  { %2341 = shalt.err (!%p2338_p2)
}
   0xa   :  { %s2342_s7 = scalar_lea.vmem %s22_s21, 64  ;;  %p2347_p4 = scmp.lt.s32.totalorder %s22_s21, %s22_s21 }
   0xb   :  { %p2343_p3 = scmp.ne.s32.totalorder %s22_s21, %s2342_s7  ;;  %p2348_p5 = scmp.lt.s32.totalorder %s2342_s7, %s2342_s7 }
   0xd   :  { %p2349_p6 = por %p2348_p5, %p2347_p4 }
   0xf   :  { %p2350_p7 = pnand %p2349_p6, %p2343_p3 }
  0x11   :  { %2353 = shalt.err (!%p2350_p7)
}
  0x12   :  { %24 = dma.hbm_to_vmem [thread:$0]  %s2891_s1, 64, %s22_s21, [#allocation5]  }
  0x13   :  { %s2354_s12 = scalar_lea.hbm %s2895_s5, 2048 }
  0x14   :  { %p2355_p8 = scmp.ne.s32.totalorder %s2895_s5, %s2354_s12  ;;  %p2358_p9 = scmp.lt.u32.totalorder %s2354_s12, %s2895_s5 }
  0x16   :  { %p2360_p10 = pnand %p2358_p9, %p2355_p8 }
  0x18   :  { %2363 = shalt.err (!%p2360_p10)
}
  0x19   :  { %s2364_s17 = scalar_lea.vmem %s2447_s23, 2048  ;;  %p2369_p12 = scmp.lt.s32.totalorder %s2447_s23, %s2447_s23 }
  0x1a   :  { %p2365_p11 = scmp.ne.s32.totalorder %s2447_s23, %s2364_s17  ;;  %p2370_p13 = scmp.lt.s32.totalorder %s2364_s17, %s2364_s17 }
  0x1c   :  { %p2371_p0 = por %p2370_p13, %p2369_p12 }
  0x1e   :  { %p2372_p1 = pnand %p2371_p0, %p2365_p11 }
  0x20   :  { %2375 = shalt.err (!%p2372_p1)
}
  0x21   :  { %s2406_s1 = smov 128   ;;  %s2407_s18 = smov 8  }
  0x22   :  { %42 = dma.hbm_to_vmem [thread:$0]  %s2895_s5, 2048, %s2447_s23, [#allocation8], %s2406_s1, %s2406_s1, %s2407_s18  }
  0x23   :  { %2398 = dma.done.wait [#allocation5], 64  }
  0x24   :  { %2399 = vsyncadd [#allocation5], 4294967232 }
  0x25   :  { %2400 = dma.done.wait [#allocation8], 2048  }
  0x26   :  { %2401 = vsyncadd [#allocation8], 4294965248  ;;  %v2408_v0 = vmov 0.0|0.0   ;;  %vm2409_vm0 = vmmov 0   ;;  %v2410_v1 = vmov 0.0   ;;  %v52_v2 = vld [vmem:[#allocation7] sm:$0xff] }
  0x27   :  { %2013 = vmatprep.subr.bf16.mxu0 %v2408_v0  ;;  %1625 = vmatprep.mubr.msk.f32.mxu0 %vm2409_vm0, %v2410_v1  ;;  %v53_v3 = vld [vmem:[#allocation7 + $0x8] sm:$0xff]  ;;  %v54_v4 = vld [vmem:[#allocation7 + $0x10] sm:$0xff]  ;;  %v69_v5 = vand.u32 4294901760, %v52_v2  ;;  %v55_v7 = vld [vmem:[#allocation7 + $0x18] sm:$0xff]  ;;  %s2411_s24 = smov [#allocation9]  }
  0x28   :  { %2157 = vmatprep.subr.bf16.mxu1 %v2408_v0  ;;  %1835 = vmatprep.mubr.msk.f32.mxu1 %vm2409_vm0, %v2410_v1  ;;  %v72_v6 = vand.u32 4294901760, %v53_v3  ;;  %v75_v8 = vand.u32 4294901760, %v54_v4  ;;  %v78_v9 = vand.u32 4294901760, %v55_v7  ;;  %v56_v10 = vld [vmem:[#allocation7 + $0x20] sm:$0xff]  ;;  %v57_v11 = vld [vmem:[#allocation7 + $0x28] sm:$0xff]  ;;  %v58_v16 = vld [vmem:[#allocation7 + $0x30] sm:$0xff] }
  0x29   :  { %v81_v14 = vand.u32 4294901760, %v56_v10  ;;  %v84_v15 = vand.u32 4294901760, %v57_v11  ;;  %v59_v17 = vld [vmem:[#allocation7 + $0x38] sm:$0xff]  ;;  %v87_v21 = vand.u32 4294901760, %v58_v16  ;;  %v60_v23 = vld [vmem:[#allocation7 + $0x40] sm:$0xff]  ;;  %v61_v24 = vld [vmem:[#allocation7 + $0x48] sm:$0xff]  ;;  %v2503_v30 = vsub.f32 %v52_v2, %v69_v5 }
  0x2a   :  { %v2484_v12 = vpack.c.bf16 %v72_v6, %v69_v5  ;;  %v2487_v13 = vpack.c.bf16 %v78_v9, %v75_v8  ;;  %v49_v18 = vld [vmem:[#allocation4] sm:$0xf]  ;;  %v90_v22 = vand.u32 4294901760, %v59_v17  ;;  %v62_v26 = vld [vmem:[#allocation7 + $0x50] sm:$0xff]  ;;  %v64_v28 = vld [vmem:[#allocation7 + $0x60] sm:$0xff]  ;;  %v93_v32 = vand.u32 4294901760, %v60_v23 }
  0x2b   :  { %v50_v19 = vld [vmem:[%s2892_s2] sm:$0xf]  ;;  %v2496_v20 = vpack.c.bf16 %v84_v15, %v81_v14  ;;  %v65_v29 = vld [vmem:[#allocation7 + $0x68] sm:$0xff]  ;;  %v96_v33 = vand.u32 4294901760, %v61_v24  ;;  %v66_v34 = vld [vmem:[#allocation7 + $0x70] sm:$0xff]  ;;  %v2508_v36 = vsub.f32 %v53_v3, %v72_v6  ;;  %v99_v38 = vand.u32 4294901760, %v62_v26 }
  0x2c   :  { %2015 = vmatpush3.bf16.msra.mxu0 %v2484_v12  ;;  %2159 = vmatpush3.bf16.msra.mxu1 %v2484_v12  ;;  %v2500_v25 = vadd.f32 %v50_v19, %v49_v18  ;;  %v63_v27 = vld [vmem:[#allocation7 + $0x58] sm:$0xff]  ;;  %v2506_v31 = vpack.c.bf16 %v90_v22, %v87_v21  ;;  %v105_v40 = vand.u32 4294901760, %v64_v28  ;;  %v108_v41 = vand.u32 4294901760, %v65_v29  ;;  %s1377_s25 = sshll.u32 %s2411_s24, 4  ;;  %s1378_s25 = int_to_ptr.vmem [resolvable:$true] %s1377_s25 }
  0x2d   :  { %2016 = vmatprep.subr.bf16.mxu0 %v2408_v0  ;;  %2160 = vmatprep.subr.bf16.mxu1 %v2408_v0  ;;  %v67_v35 = vld [vmem:[#allocation7 + $0x78] sm:$0xff]  ;;  %v102_v39 = vand.u32 4294901760, %v63_v27  ;;  %v111_v42 = vand.u32 4294901760, %v66_v34  ;;  %v162_v44 = vand.u32 4294901760, %v2503_v30  ;;  %v2517_v45 = vsub.f32 %v54_v4, %v75_v8  ;;  %s2376_s26 = scalar_lea.vmem %s1378_s25, 64  ;;  %p2381_p3 = scmp.lt.s32.totalorder %s1378_s25, %s1378_s25 }
  0x2e   :  { %v2513_v37 = vand.u32 4294901760, %v2500_v25  ;;  %v114_v43 = vand.u32 4294901760, %v67_v35  ;;  %v2520_v46 = vpack.c.bf16 %v96_v33, %v93_v32  ;;  %v169_v47 = vand.u32 4294901760, %v2508_v36  ;;  %p2377_p2 = scmp.ne.s32.totalorder %s1378_s25, %s2376_s26  ;;  %p2382_p4 = scmp.lt.s32.totalorder %s2376_s26, %s2376_s26 }
  0x2f   :  { %v2523_v48 = vsub.f32 %v55_v7, %v78_v9  ;;  %v2525_v49 = vsub.f32 %v56_v10, %v81_v14  ;;  %v2534_v51 = vpack.c.bf16 %v102_v39, %v99_v38  ;;  %v2536_v52 = vpack.c.bf16 %v108_v41, %v105_v40 }
  0x30   :  { %2018 = vmatpush3.bf16.msra.mxu0 %v2487_v13  ;;  %2162 = vmatpush3.bf16.msra.mxu1 %v2487_v13  ;;  %v2531_v50 = vsub.f32 %v2500_v25, %v2513_v37  ;;  %v2538_v53 = vpack.c.bf16 %v114_v43, %v111_v42  ;;  %v163_v54 = vsub.f32 %v2503_v30, %v162_v44  ;;  %v176_v55 = vand.u32 4294901760, %v2517_v45  ;;  %p2383_p5 = por %p2382_p4, %p2381_p3 }
  0x31   :  { %2019 = vmatprep.subr.bf16.mxu0 %v2408_v0  ;;  %2163 = vmatprep.subr.bf16.mxu1 %v2408_v0  ;;  %v2542_v56 = vsub.f32 %v57_v11, %v84_v15  ;;  %v170_v57 = vsub.f32 %v2508_v36, %v169_v47  ;;  %v183_v58 = vand.u32 4294901760, %v2523_v48  ;;  %v190_v59 = vand.u32 4294901760, %v2525_v49 }
  0x32   :  { %v2548_v60 = vsub.f32 %v58_v16, %v87_v21  ;;  %v151_v61 = vand.u32 4294901760, %v2531_v50  ;;  %v2553_v62 = vsub.f32 %v59_v17, %v90_v22  ;;  %v2555_v63 = vsub.f32 %v60_v23, %v93_v32  ;;  %p2384_p6 = pnand %p2383_p5, %p2377_p2 }
  0x33   :  { %v2557_v2 = vsub.f32 %v61_v24, %v96_v33  ;;  %v2560_v3 = vsub.f32 %v62_v26, %v99_v38  ;;  %v2562_v4 = vsub.f32 %v63_v27, %v102_v39  ;;  %v2564_v5 = vsub.f32 %v64_v28, %v105_v40 }
  0x34   :  { %2021 = vmatpush3.bf16.msra.mxu0 %v2496_v20  ;;  %2165 = vmatpush3.bf16.msra.mxu1 %v2496_v20  ;;  %v2566_v6 = vsub.f32 %v65_v29, %v108_v41  ;;  %v164_v7 = vand.u32 4294901760, %v163_v54  ;;  %v197_v8 = vand.u32 4294901760, %v2542_v56  ;;  %v2569_v9 = vsub.f32 %v66_v34, %v111_v42 }
  0x35   :  { %2022 = vmatprep.subr.bf16.mxu0 %v2408_v0  ;;  %2166 = vmatprep.subr.bf16.mxu1 %v2408_v0  ;;  %v2571_v10 = vsub.f32 %v67_v35, %v114_v43  ;;  %v171_v11 = vand.u32 4294901760, %v170_v57  ;;  %v177_v14 = vsub.f32 %v2517_v45, %v176_v55  ;;  %v184_v15 = vsub.f32 %v2523_v48, %v183_v58 }
  0x36   :  { %v204_v16 = vand.u32 4294901760, %v2548_v60  ;;  %v152_v17 = vsub.f32 %v2531_v50, %v151_v61  ;;  %v211_v18 = vand.u32 4294901760, %v2553_v62  ;;  %v218_v19 = vand.u32 4294901760, %v2555_v63 }
  0x37   :  { %v225_v21 = vand.u32 4294901760, %v2557_v2  ;;  %v232_v22 = vand.u32 4294901760, %v2560_v3  ;;  %v239_v23 = vand.u32 4294901760, %v2562_v4  ;;  %v246_v24 = vand.u32 4294901760, %v2564_v5 }
  0x38   :  { %2024 = vmatpush3.bf16.msra.mxu0 %v2506_v31  ;;  %2168 = vmatpush3.bf16.msra.mxu1 %v2506_v31  ;;  %v253_v26 = vand.u32 4294901760, %v2566_v6  ;;  %v260_v27 = vand.u32 4294901760, %v2569_v9  ;;  %v267_v28 = vand.u32 4294901760, %v2571_v10  ;;  %v2592_v29 = vpack.c.bf16 %v169_v47, %v162_v44 }
  0x39   :  { %2025 = vmatprep.subr.bf16.mxu0 %v2408_v0  ;;  %2169 = vmatprep.subr.bf16.mxu1 %v2408_v0  ;;  %v2594_v32 = vpack.c.bf16 %v183_v58, %v176_v55  ;;  %v2597_v33 = vpack.c.bf16 %v197_v8, %v190_v59  ;;  %v2599_v34 = vpack.c.bf16 %v211_v18, %v204_v16  ;;  %v153_v41 = vand.u32 4294901760, %v152_v17 }
  0x3a   :  { %v2601_v35 = vpack.c.bf16 %v225_v21, %v218_v19  ;;  %v2603_v38 = vpack.c.bf16 %v239_v23, %v232_v22  ;;  %v2606_v39 = vpack.c.bf16 %v253_v26, %v246_v24  ;;  %v2608_v40 = vpack.c.bf16 %v267_v28, %v260_v27 }
  0x3b   :  { %v191_v42 = vsub.f32 %v2525_v49, %v190_v59  ;;  %v2614_v43 = vpack.c.bf16 %v171_v11, %v164_v7  ;;  %v178_v44 = vand.u32 4294901760, %v177_v14  ;;  %v185_v47 = vand.u32 4294901760, %v184_v15 }
  0x3c   :  { %2027 = vmatpush3.bf16.msra.mxu0 %v2520_v46  ;;  %2171 = vmatpush3.bf16.msra.mxu1 %v2520_v46  ;;  %v198_v54 = vsub.f32 %v2542_v56, %v197_v8  ;;  %v205_v55 = vsub.f32 %v2548_v60, %v204_v16  ;;  %v212_v7 = vsub.f32 %v2553_v62, %v211_v18 }
  0x3d   :  { %2028 = vmatprep.subr.bf16.mxu0 %v2408_v0  ;;  %2172 = vmatprep.subr.bf16.mxu1 %v2408_v0  ;;  %v2622_v57 = vpack.c.bf16 %v185_v47, %v178_v44  ;;  %v192_v58 = vand.u32 4294901760, %v191_v42  ;;  %v219_v15 = vsub.f32 %v2555_v63, %v218_v19  ;;  %v226_v16 = vsub.f32 %v2557_v2, %v225_v21 }
  0x3e   :  { %v199_v59 = vand.u32 4294901760, %v198_v54  ;;  %v206_v8 = vand.u32 4294901760, %v205_v55  ;;  %v213_v14 = vand.u32 4294901760, %v212_v7  ;;  %v233_v17 = vsub.f32 %v2560_v3, %v232_v22 }
  0x3f   :  { %v227_v42 = vand.u32 4294901760, %v226_v16  ;;  %v240_v44 = vsub.f32 %v2562_v4, %v239_v23  ;;  %v247_v47 = vsub.f32 %v2564_v5, %v246_v24  ;;  %v254_v22 = vsub.f32 %v2566_v6, %v253_v26 }
  0x40   :  { %2030 = vmatpush3.bf16.msra.mxu0 %v2534_v51  ;;  %2174 = vmatpush3.bf16.msra.mxu1 %v2534_v51  ;;  %v2629_v11 = vpack.c.bf16 %v199_v59, %v192_v58  ;;  %v2636_v18 = vpack.c.bf16 %v213_v14, %v206_v8  ;;  %v234_v21 = vand.u32 4294901760, %v233_v17  ;;  %v261_v55 = vsub.f32 %v2569_v9, %v260_v27 }
  0x41   :  { %2031 = vmatprep.subr.bf16.mxu0 %v2408_v0  ;;  %2175 = vmatprep.subr.bf16.mxu1 %v2408_v0  ;;  %v241_v54 = vand.u32 4294901760, %v240_v44  ;;  %v248_v23 = vand.u32 4294901760, %v247_v47  ;;  %v255_v59 = vand.u32 4294901760, %v254_v22  ;;  %v268_v24 = vsub.f32 %v2571_v10, %v267_v28 }
  0x42   :  { %v262_v8 = vand.u32 4294901760, %v261_v55  ;;  %v2663_v28 = vpack.c.bf16 %v2508_v36, %v2503_v30  ;;  %v2670_v14 = vpack.c.bf16 %v2523_v48, %v2517_v45  ;;  %v2678_v30 = vpack.c.bf16 %v2542_v56, %v2525_v49 }
  0x43   :  { %v2648_v58 = vpack.c.bf16 %v241_v54, %v234_v21  ;;  %v2653_v7 = vpack.c.bf16 %v255_v59, %v248_v23  ;;  %v269_v26 = vand.u32 4294901760, %v268_v24  ;;  %v2684_v36 = vpack.c.bf16 %v2553_v62, %v2548_v60 }
  0x44   :  { %2033 = vmatpush3.bf16.msra.mxu0 %v2536_v52  ;;  %2177 = vmatpush3.bf16.msra.mxu1 %v2536_v52  ;;  %v2690_v45 = vpack.c.bf16 %v2557_v2, %v2555_v63  ;;  %v2696_v48 = vpack.c.bf16 %v2562_v4, %v2560_v3  ;;  %v2702_v49 = vpack.c.bf16 %v2566_v6, %v2564_v5 }
  0x45   :  { %2034 = vmatprep.subr.bf16.mxu0 %v2408_v0  ;;  %2178 = vmatprep.subr.bf16.mxu1 %v2408_v0  ;;  %v2657_v27 = vpack.c.bf16 %v269_v26, %v262_v8  ;;  %v2708_v56 = vpack.c.bf16 %v2571_v10, %v2569_v9 }
  0x48   :  { %2036 = vmatpush3.bf16.msra.mxu0 %v2538_v53  ;;  %2180 = vmatpush3.bf16.msra.mxu1 %v2538_v53 }
  0x49   :  { %2037 = vmatprep.subr.bf16.mxu0 %v2408_v0  ;;  %2181 = vmatprep.subr.bf16.mxu1 %v2408_v0 }
  0x4b   :  { %1626 = vmatmul.mubr.f32.vlgmr.msra.gmra.mrb[0].mxu0 %v153_v41  ;;  %v220_v41 = vand.u32 4294901760, %v219_v15 }
  0x4c   :  { %2039 = vmatpush3.bf16.msra.mxu0 %v2614_v43  ;;  %1660 = vmatprep.mubr.msk.f32.mxu0 %vm2409_vm0, %v2410_v1 }
  0x4d   :  { %2040 = vmatprep.subr.bf16.mxu0 %v2408_v0  ;;  %v2642_v19 = vpack.c.bf16 %v227_v42, %v220_v41 }
  0x50   :  { %2042 = vmatpush3.bf16.msra.mxu0 %v2622_v57 }
  0x51   :  { %2043 = vmatprep.subr.bf16.mxu0 %v2408_v0 }
  0x54   :  { %2045 = vmatpush3.bf16.msra.mxu0 %v2629_v11 }
  0x55   :  { %2046 = vmatprep.subr.bf16.mxu0 %v2408_v0 }
  0x58   :  { %2048 = vmatpush3.bf16.msra.mxu0 %v2636_v18 }
  0x59   :  { %2049 = vmatprep.subr.bf16.mxu0 %v2408_v0 }
  0x5c   :  { %2051 = vmatpush3.bf16.msra.mxu0 %v2642_v19 }
  0x5d   :  { %2052 = vmatprep.subr.bf16.mxu0 %v2408_v0 }
  0x60   :  { %2054 = vmatpush3.bf16.msra.mxu0 %v2648_v58 }
  0x61   :  { %2055 = vmatprep.subr.bf16.mxu0 %v2408_v0 }
  0x64   :  { %2057 = vmatpush3.bf16.msra.mxu0 %v2653_v7 }
  0x65   :  { %2058 = vmatprep.subr.bf16.mxu0 %v2408_v0 }
  0x68   :  { %2060 = vmatpush3.bf16.msra.mxu0 %v2657_v27 }
  0x69   :  { %2061 = vmatprep.subr.bf16.mxu0 %v2408_v0 }
  0x6b   :  { %1661 = vmatmul.mubr.f32.vlgmr.msra.gmra.mrb[0].mxu0 %v2513_v37 }
  0x6c   :  { %2063 = vmatpush3.bf16.msra.mxu0 %v2663_v28  ;;  %1695 = vmatprep.mubr.msk.f32.mxu0 %vm2409_vm0, %v2410_v1 }
  0x6d   :  { %2064 = vmatprep.subr.bf16.mxu0 %v2408_v0 }
  0x70   :  { %2066 = vmatpush3.bf16.msra.mxu0 %v2670_v14 }
  0x71   :  { %2067 = vmatprep.subr.bf16.mxu0 %v2408_v0 }
  0x74   :  { %2069 = vmatpush3.bf16.msra.mxu0 %v2678_v30 }
  0x75   :  { %2070 = vmatprep.subr.bf16.mxu0 %v2408_v0 }
  0x78   :  { %2072 = vmatpush3.bf16.msra.mxu0 %v2684_v36 }
  0x79   :  { %2073 = vmatprep.subr.bf16.mxu0 %v2408_v0 }
  0x7c   :  { %2075 = vmatpush3.bf16.msra.mxu0 %v2690_v45 }
  0x7d   :  { %2076 = vmatprep.subr.bf16.mxu0 %v2408_v0 }
  0x80   :  { %2078 = vmatpush3.bf16.msra.mxu0 %v2696_v48 }
  0x81   :  { %2079 = vmatprep.subr.bf16.mxu0 %v2408_v0 }
  0x84   :  { %2081 = vmatpush3.bf16.msra.mxu0 %v2702_v49 }
  0x85   :  { %2082 = vmatprep.subr.bf16.mxu0 %v2408_v0 }
  0x88   :  { %2084 = vmatpush3.bf16.msra.mxu0 %v2708_v56 }
  0x89   :  { %2085 = vmatprep.subr.bf16.mxu0 %v2408_v0 }
  0x8b   :  { %1696 = vmatmul.mubr.f32.vlgmr.msra.gmra.mrb[0].mxu0 %v2531_v50 }
  0x8c   :  { %2087 = vmatpush3.bf16.msra.mxu0 %v2484_v12  ;;  %1730 = vmatprep.mubr.msk.f32.mxu0 %vm2409_vm0, %v2410_v1 }
  0x8d   :  { %2088 = vmatprep.subr.bf16.mxu0 %v2408_v0 }
  0x90   :  { %2090 = vmatpush3.bf16.msra.mxu0 %v2487_v13 }
  0x91   :  { %2091 = vmatprep.subr.bf16.mxu0 %v2408_v0 }
  0x94   :  { %2093 = vmatpush3.bf16.msra.mxu0 %v2496_v20 }
  0x95   :  { %2094 = vmatprep.subr.bf16.mxu0 %v2408_v0 }
  0x98   :  { %2096 = vmatpush3.bf16.msra.mxu0 %v2506_v31 }
  0x99   :  { %2097 = vmatprep.subr.bf16.mxu0 %v2408_v0 }
  0x9c   :  { %2099 = vmatpush3.bf16.msra.mxu0 %v2520_v46 }
  0x9d   :  { %2100 = vmatprep.subr.bf16.mxu0 %v2408_v0 }
  0xa0   :  { %2102 = vmatpush3.bf16.msra.mxu0 %v2534_v51 }
  0xa1   :  { %2103 = vmatprep.subr.bf16.mxu0 %v2408_v0 }
  0xa4   :  { %2105 = vmatpush3.bf16.msra.mxu0 %v2536_v52 }
  0xa5   :  { %2106 = vmatprep.subr.bf16.mxu0 %v2408_v0 }
  0xa8   :  { %2108 = vmatpush3.bf16.msra.mxu0 %v2538_v53 }
  0xa9   :  { %2109 = vmatprep.subr.bf16.mxu0 %v2408_v0 }
  0xab   :  { %1731 = vmatmul.mubr.f32.vlgmr.msra.gmra.mrb[0].mxu0 %v151_v61 }
  0xac   :  { %2111 = vmatpush3.bf16.msra.mxu0 %v2592_v29  ;;  %1765 = vmatprep.mubr.msk.f32.mxu0 %vm2409_vm0, %v2410_v1 }
  0xad   :  { %2112 = vmatprep.subr.bf16.mxu0 %v2408_v0 }
  0xb0   :  { %2114 = vmatpush3.bf16.msra.mxu0 %v2594_v32 }
  0xb1   :  { %2115 = vmatprep.subr.bf16.mxu0 %v2408_v0 }
  0xb4   :  { %2117 = vmatpush3.bf16.msra.mxu0 %v2597_v33 }
  0xb5   :  { %2118 = vmatprep.subr.bf16.mxu0 %v2408_v0 }
  0xb8   :  { %2120 = vmatpush3.bf16.msra.mxu0 %v2599_v34 }
  0xb9   :  { %2121 = vmatprep.subr.bf16.mxu0 %v2408_v0 }
  0xbc   :  { %2123 = vmatpush3.bf16.msra.mxu0 %v2601_v35 }
  0xbd   :  { %2124 = vmatprep.subr.bf16.mxu0 %v2408_v0 }
  0xc0   :  { %2126 = vmatpush3.bf16.msra.mxu0 %v2603_v38 }
  0xc1   :  { %2127 = vmatprep.subr.bf16.mxu0 %v2408_v0 }
  0xc4   :  { %2129 = vmatpush3.bf16.msra.mxu0 %v2606_v39 }
  0xc5   :  { %2130 = vmatprep.subr.bf16.mxu0 %v2408_v0 }
  0xc8   :  { %2132 = vmatpush3.bf16.msra.mxu0 %v2608_v40 }
  0xc9   :  { %2133 = vmatprep.subr.bf16.mxu0 %v2408_v0 }
  0xcb   :  { %1766 = vmatmul.mubr.f32.vlgmr.msra.gmra.mrb[0].mxu0 %v2513_v37 }
  0xcc   :  { %2135 = vmatpush3.bf16.msra.mxu0 %v2484_v12  ;;  %1800 = vmatprep.mubr.msk.f32.mxu0 %vm2409_vm0, %v2410_v1 }
  0xcd   :  { %2136 = vmatprep.subr.bf16.mxu0 %v2408_v0 }
  0xd0   :  { %2138 = vmatpush3.bf16.msra.mxu0 %v2487_v13 }
  0xd1   :  { %2139 = vmatprep.subr.bf16.mxu0 %v2408_v0 }
  0xd4   :  { %2141 = vmatpush3.bf16.msra.mxu0 %v2496_v20 }
  0xd5   :  { %2142 = vmatprep.subr.bf16.mxu0 %v2408_v0 }
  0xd8   :  { %2144 = vmatpush3.bf16.msra.mxu0 %v2506_v31 }
  0xd9   :  { %2145 = vmatprep.subr.bf16.mxu0 %v2408_v0 }
  0xdc   :  { %2147 = vmatpush3.bf16.msra.mxu0 %v2520_v46 }
  0xdd   :  { %2148 = vmatprep.subr.bf16.mxu0 %v2408_v0 }
  0xe0   :  { %2150 = vmatpush3.bf16.msra.mxu0 %v2534_v51 }
  0xe1   :  { %2151 = vmatprep.subr.bf16.mxu0 %v2408_v0 }
  0xe4   :  { %2153 = vmatpush3.bf16.msra.mxu0 %v2536_v52 }
  0xe5   :  { %2154 = vmatprep.subr.bf16.mxu0 %v2408_v0 }
  0xe8   :  { %2156 = vmatpush3.bf16.msra.mxu0 %v2538_v53 }
  0xeb   :  { %1801 = vmatmul.mubr.f32.vlgmr.msra.gmra.mrb[0].mxu0 %v2513_v37  ;;  %v1388_v37 = vld [vmem:[%s2894_s4] ss:$0 sm:$0xff] }
 0x1be   :  { %v705_v50 = vpop.f32.mrb[0].mxu0 }
 0x1bf   :  { %v2772_v60 = vsub.f32 %v2500_v25, %v705_v50  ;;  %v1802_v61 = vpop.f32.mrb[1].mxu0  ;;  %v1387_v25 = vld [vmem:[%s2893_s3] ss:$0 sm:$0xff] }
 0x1c1   :  { %v710_v62 = vmul.f32 %v2772_v60, %v2772_v60 }
 0x1c3   :  { %v2776_v63 = vand.u32 4294901760, %v710_v62 }
 0x1c5   :  { %v793_v2 = vsub.f32 %v710_v62, %v2776_v63 }
 0x1c7   :  { %v794_v3 = vand.u32 4294901760, %v793_v2 }
 0x1c9   :  { %v795_v4 = vsub.f32 %v793_v2, %v794_v3 }
 0x1cb   :  { %v796_v5 = vand.u32 4294901760, %v795_v4 }
 0x1cd   :  { %1836 = vmatmul.mubr.f32.vlgmr.msra.gmra.mrb[0].mxu1 %v796_v5 }
 0x1ce   :  { %2183 = vmatpush3.bf16.msra.mxu1 %v2614_v43  ;;  %1870 = vmatprep.mubr.msk.f32.mxu1 %vm2409_vm0, %v2410_v1 }
 0x1cf   :  { %2184 = vmatprep.subr.bf16.mxu1 %v2408_v0 }
 0x1d2   :  { %2186 = vmatpush3.bf16.msra.mxu1 %v2622_v57 }
 0x1d3   :  { %2187 = vmatprep.subr.bf16.mxu1 %v2408_v0 }
 0x1d6   :  { %2189 = vmatpush3.bf16.msra.mxu1 %v2629_v11 }
 0x1d7   :  { %2190 = vmatprep.subr.bf16.mxu1 %v2408_v0 }
 0x1da   :  { %2192 = vmatpush3.bf16.msra.mxu1 %v2636_v18 }
 0x1db   :  { %2193 = vmatprep.subr.bf16.mxu1 %v2408_v0 }
 0x1de   :  { %2195 = vmatpush3.bf16.msra.mxu1 %v2642_v19 }
 0x1df   :  { %2196 = vmatprep.subr.bf16.mxu1 %v2408_v0 }
 0x1e2   :  { %2198 = vmatpush3.bf16.msra.mxu1 %v2648_v58 }
 0x1e3   :  { %2199 = vmatprep.subr.bf16.mxu1 %v2408_v0 }
 0x1e6   :  { %2201 = vmatpush3.bf16.msra.mxu1 %v2653_v7 }
 0x1e7   :  { %2202 = vmatprep.subr.bf16.mxu1 %v2408_v0 }
 0x1ea   :  { %2204 = vmatpush3.bf16.msra.mxu1 %v2657_v27 }
 0x1eb   :  { %2205 = vmatprep.subr.bf16.mxu1 %v2408_v0 }
 0x1ed   :  { %1871 = vmatmul.mubr.f32.vlgmr.msra.gmra.mrb[0].mxu1 %v2776_v63 }
 0x1ee   :  { %2207 = vmatpush3.bf16.msra.mxu1 %v2663_v28  ;;  %1905 = vmatprep.mubr.msk.f32.mxu1 %vm2409_vm0, %v2410_v1 }
 0x1ef   :  { %2208 = vmatprep.subr.bf16.mxu1 %v2408_v0 }
 0x1f2   :  { %2210 = vmatpush3.bf16.msra.mxu1 %v2670_v14 }
 0x1f3   :  { %2211 = vmatprep.subr.bf16.mxu1 %v2408_v0 }
 0x1f6   :  { %2213 = vmatpush3.bf16.msra.mxu1 %v2678_v30 }
 0x1f7   :  { %2214 = vmatprep.subr.bf16.mxu1 %v2408_v0 }
 0x1fa   :  { %2216 = vmatpush3.bf16.msra.mxu1 %v2684_v36 }
 0x1fb   :  { %2217 = vmatprep.subr.bf16.mxu1 %v2408_v0 }
 0x1fe   :  { %2219 = vmatpush3.bf16.msra.mxu1 %v2690_v45 }
 0x1ff   :  { %2220 = vmatprep.subr.bf16.mxu1 %v2408_v0 }
 0x202   :  { %2222 = vmatpush3.bf16.msra.mxu1 %v2696_v48 }
 0x203   :  { %2223 = vmatprep.subr.bf16.mxu1 %v2408_v0 }
 0x206   :  { %2225 = vmatpush3.bf16.msra.mxu1 %v2702_v49 }
 0x207   :  { %2226 = vmatprep.subr.bf16.mxu1 %v2408_v0 }
 0x20a   :  { %2228 = vmatpush3.bf16.msra.mxu1 %v2708_v56 }
 0x20b   :  { %2229 = vmatprep.subr.bf16.mxu1 %v2408_v0 }
 0x20d   :  { %1906 = vmatmul.mubr.f32.vlgmr.msra.gmra.mrb[0].mxu1 %v793_v2 }
 0x20e   :  { %2231 = vmatpush3.bf16.msra.mxu1 %v2484_v12  ;;  %1940 = vmatprep.mubr.msk.f32.mxu1 %vm2409_vm0, %v2410_v1 }
 0x20f   :  { %2232 = vmatprep.subr.bf16.mxu1 %v2408_v0 }
 0x212   :  { %2234 = vmatpush3.bf16.msra.mxu1 %v2487_v13 }
 0x213   :  { %2235 = vmatprep.subr.bf16.mxu1 %v2408_v0 }
 0x216   :  { %2237 = vmatpush3.bf16.msra.mxu1 %v2496_v20 }
 0x217   :  { %2238 = vmatprep.subr.bf16.mxu1 %v2408_v0 }
 0x21a   :  { %2240 = vmatpush3.bf16.msra.mxu1 %v2506_v31 }
 0x21b   :  { %2241 = vmatprep.subr.bf16.mxu1 %v2408_v0 }
 0x21e   :  { %2243 = vmatpush3.bf16.msra.mxu1 %v2520_v46 }
 0x21f   :  { %2244 = vmatprep.subr.bf16.mxu1 %v2408_v0 }
 0x222   :  { %2246 = vmatpush3.bf16.msra.mxu1 %v2534_v51 }
 0x223   :  { %2247 = vmatprep.subr.bf16.mxu1 %v2408_v0 }
 0x226   :  { %2249 = vmatpush3.bf16.msra.mxu1 %v2536_v52 }
 0x227   :  { %2250 = vmatprep.subr.bf16.mxu1 %v2408_v0 }
 0x22a   :  { %2252 = vmatpush3.bf16.msra.mxu1 %v2538_v53 }
 0x22b   :  { %2253 = vmatprep.subr.bf16.mxu1 %v2408_v0 }
 0x22d   :  { %1941 = vmatmul.mubr.f32.vlgmr.msra.gmra.mrb[0].mxu1 %v794_v3 }
 0x22e   :  { %2255 = vmatpush3.bf16.msra.mxu1 %v2592_v29  ;;  %1975 = vmatprep.mubr.msk.f32.mxu1 %vm2409_vm0, %v2410_v1 }
 0x22f   :  { %2256 = vmatprep.subr.bf16.mxu1 %v2408_v0 }
 0x232   :  { %2258 = vmatpush3.bf16.msra.mxu1 %v2594_v32 }
 0x233   :  { %2259 = vmatprep.subr.bf16.mxu1 %v2408_v0 }
 0x236   :  { %2261 = vmatpush3.bf16.msra.mxu1 %v2597_v33 }
 0x237   :  { %2262 = vmatprep.subr.bf16.mxu1 %v2408_v0 }
 0x23a   :  { %2264 = vmatpush3.bf16.msra.mxu1 %v2599_v34 }
 0x23b   :  { %2265 = vmatprep.subr.bf16.mxu1 %v2408_v0 }
 0x23e   :  { %2267 = vmatpush3.bf16.msra.mxu1 %v2601_v35 }
 0x23f   :  { %2268 = vmatprep.subr.bf16.mxu1 %v2408_v0 }
 0x242   :  { %2270 = vmatpush3.bf16.msra.mxu1 %v2603_v38 }
 0x243   :  { %2271 = vmatprep.subr.bf16.mxu1 %v2408_v0 }
 0x246   :  { %2273 = vmatpush3.bf16.msra.mxu1 %v2606_v39 }
 0x247   :  { %2274 = vmatprep.subr.bf16.mxu1 %v2408_v0 }
 0x24a   :  { %2276 = vmatpush3.bf16.msra.mxu1 %v2608_v40 }
 0x24b   :  { %2277 = vmatprep.subr.bf16.mxu1 %v2408_v0 }
 0x24d   :  { %1976 = vmatmul.mubr.f32.vlgmr.msra.gmra.mrb[0].mxu1 %v2776_v63 }
 0x24e   :  { %2279 = vmatpush3.bf16.msra.mxu1 %v2484_v12  ;;  %2010 = vmatprep.mubr.msk.f32.mxu1 %vm2409_vm0, %v2410_v1 }
 0x24f   :  { %2280 = vmatprep.subr.bf16.mxu1 %v2408_v0 }
 0x252   :  { %2282 = vmatpush3.bf16.msra.mxu1 %v2487_v13 }
 0x253   :  { %2283 = vmatprep.subr.bf16.mxu1 %v2408_v0 }
 0x256   :  { %2285 = vmatpush3.bf16.msra.mxu1 %v2496_v20 }
 0x257   :  { %2286 = vmatprep.subr.bf16.mxu1 %v2408_v0 }
 0x25a   :  { %2288 = vmatpush3.bf16.msra.mxu1 %v2506_v31 }
 0x25b   :  { %2289 = vmatprep.subr.bf16.mxu1 %v2408_v0 }
 0x25e   :  { %2291 = vmatpush3.bf16.msra.mxu1 %v2520_v46 }
 0x25f   :  { %2292 = vmatprep.subr.bf16.mxu1 %v2408_v0 }
 0x262   :  { %2294 = vmatpush3.bf16.msra.mxu1 %v2534_v51 }
 0x263   :  { %2295 = vmatprep.subr.bf16.mxu1 %v2408_v0 }
 0x266   :  { %2297 = vmatpush3.bf16.msra.mxu1 %v2536_v52 }
 0x267   :  { %2298 = vmatprep.subr.bf16.mxu1 %v2408_v0 }
 0x26a   :  { %2300 = vmatpush3.bf16.msra.mxu1 %v2538_v53 }
 0x26d   :  { %2011 = vmatmul.mubr.f32.vlgmr.msra.gmra.mrb[0].mxu1 %v2776_v63 }
 0x340   :  { %v1348_v1 = vpop.f32.mrb[0].mxu1 }
 0x341   :  { %v2301_v12 = vadd.f32 1e-05, %v1348_v1  ;;  %v2012_v13 = vpop.f32.mrb[1].mxu1 }
 0x343   :  { %2330 = vrsqrt.f32 %v2301_v12 }
 0x34d   :  { %v2331_v20 = vpop.eup %2330 }
 0x34e   :  { %v1353_v31 = vmul.f32 %v2331_v20, %v2772_v60 }
 0x350   :  { %v1361_v0 = vmul.f32 %v1387_v25, %v1353_v31 }
 0x352   :  { %v1369_v46 = vadd.f32 %v1388_v37, %v1361_v0 }
 0x354   :  { %1370 = vst [vmem:[#allocation9] sm:$0xf] %v1369_v46 }
 0x355   :  { %2387 = shalt.err (!%p2384_p6)
}
 0x356   :  { %s2388_s28 = scalar_lea.hbm %s2896_s6, 64 }
 0x357   :  { %p2389_p7 = scmp.ne.s32.totalorder %s2896_s6, %s2388_s28  ;;  %p2392_p8 = scmp.lt.u32.totalorder %s2388_s28, %s2896_s6 }
 0x359   :  { %p2394_p9 = pnand %p2392_p8, %p2389_p7 }
 0x35b   :  { %2397 = shalt.err (!%p2394_p9)
}
 0x35c   :  { %1380 = dma.vmem_to_hbm [thread:$0]  %s1378_s25, 64, %s2896_s6, [#allocation6]  }
 0x35d   :  { %2402 = dma.done.wait [#allocation6], 64  }
 0x35e   :  { %2403 = vsyncadd [#allocation6], 4294967232 }
 0x35f   :  { %1384 = vsyncpa [#allocation5], 1 }
 0x360   :  { %1385 = vsyncpa [#allocation8], 1 }
 0x361   :  { %1386 = vsyncpa [#allocation6], 1 }

</bundles_post_ra>
